<compile_context>
chip_gen: v7x
topology: tpu7x:2x2x1
jax: 0.10.0
libtpu: 0.0.40
codegen_flags: <defaults>
</compile_context>

<pallas_src>
import functools

import jax
import jax.numpy as jnp
from jax.experimental import pallas as pl
from jax.experimental.pallas import tpu as pltpu


def _round_up(v: int, m: int) -> int:
    return (v + m - 1) // m * m


def _mlp_kernel(x_ref, w1_ref, b1_ref, w2_ref, b2_ref, w3_ref, b3_ref, o_ref):
    """One batch tile: 3 MXU matmuls (f32 accumulate) + f32 bias/ReLU epilogues.

    Note: for bm >= ~64 the (bm, h) intermediates are staged through
    Mosaic-internal VMEM scratch (not vregs); that is budgeted in the wrapper.
    """
    compute_dtype = w1_ref.dtype
    # In-kernel cast (VPU) instead of a wrapper-side cast pass over HBM.
    x = x_ref[...].astype(compute_dtype)

    h1 = jnp.dot(x, w1_ref[...], preferred_element_type=jnp.float32) + b1_ref[...]
    h1 = jnp.maximum(h1, 0.0).astype(compute_dtype)

    h2 = jnp.dot(h1, w2_ref[...], preferred_element_type=jnp.float32) + b2_ref[...]
    h2 = jnp.maximum(h2, 0.0).astype(compute_dtype)

    out = jnp.dot(h2, w3_ref[...], preferred_element_type=jnp.float32) + b3_ref[...]
    o_ref[...] = out.astype(o_ref.dtype)


@functools.partial(jax.jit, static_argnames=("compute_dtype", "block_m"))
def mlp_forward(x, params, *, compute_dtype=jnp.float32, block_m=2048):
    """x: [B, i_dim]. params: dict of w1,b1,w2,b2,w3,b3 (weights [in,out], bias [1,out])."""
    w1, b1 = params["w1"], params["b1"]
    w2, b2 = params["w2"], params["b2"]
    w3, b3 = params["w3"], params["b3"]

    B, i_dim = x.shape
    h1_dim = w1.shape[1]
    h2_dim = w2.shape[1]
    o_dim = w3.shape[1]
    out_dtype = x.dtype

    # Batch tile: as large as practical, sublane-friendly multiple of 16.
    block_m = max(16, _round_up(int(block_m), 16))
    bm = min(block_m, _round_up(B, 8))
    # For large B, guarantee >=4 balanced grid steps so the "parallel" batch
    # axis shards across both TensorCores on v7x (no harm on v5e/v6e).
    if B >= 512:
        bm = min(bm, _round_up(pl.cdiv(B, 4), 8))
    b_pad = _round_up(B, bm)
    grid = (b_pad // bm,)

    # Only the batch axis ever needs padding (so the grid tiles evenly);
    # feature axes are passed at native width via full-dim blocks.
    xp = x if b_pad == B else jnp.pad(x, ((0, b_pad - B), (0, 0)))

    # Resident weights are tiny; pre-casting them once is free.  Bias/epilogue
    # math stays f32 (v5e has no bf16 VALU path).
    w1c = w1.astype(compute_dtype)
    w2c = w2.astype(compute_dtype)
    w3c = w3.astype(compute_dtype)
    b1c = b1.astype(jnp.float32)
    b2c = b2.astype(jnp.float32)
    b3c = b3.astype(jnp.float32)

    x_item = jnp.dtype(x.dtype).itemsize
    w_item = jnp.dtype(compute_dtype).itemsize
    o_item = jnp.dtype(out_dtype).itemsize
    w_elems = i_dim * h1_dim + h1_dim * h2_dim + h2_dim * o_dim

    flops = 2 * b_pad * w_elems
    bytes_accessed = (
        b_pad * i_dim * x_item          # x
        + w_elems * w_item              # weights
        + (h1_dim + h2_dim + o_dim) * 4  # biases
        + b_pad * o_dim * o_item        # out
    )

    # VMEM budget: double-buffered x/out tiles + (double-buffered) resident
    # weights/biases + Mosaic-internal scratch for the lane-padded (bm, 128)
    # f32 intermediates.  Clamp to [32 MiB, 64 MiB] (v7x has 64 MiB physical).
    vmem_est = (
        2 * bm * i_dim * x_item
        + 2 * bm * o_dim * o_item
        + 2 * w_elems * w_item
        + 2 * (h1_dim + h2_dim + o_dim) * 4
        + 4 * bm * max(128, _round_up(h1_dim, 128)) * 4
    )
    vmem_limit = int(min(max(vmem_est * 3 // 2, 32 * 1024 * 1024), 64 * 1024 * 1024))
    # TODO(synk): bump internal_scratch_in_bytes if the compiler complains at bm >= 4096.

    out = pl.pallas_call(
        _mlp_kernel,
        out_shape=jax.ShapeDtypeStruct((b_pad, o_dim), out_dtype),
        grid=grid,
        in_specs=[
            # x: tiled along batch, native feature width (full-dim last axis),
            # double-buffered by the Pallas pipeline.
            pl.BlockSpec((bm, i_dim), lambda i: (i, 0)),
            # Weights / biases: constant block index, full-dim blocks -> stay
            # VMEM-resident (Pallas skips the re-DMA when the index is unchanged).
            pl.BlockSpec((i_dim, h1_dim), lambda i: (0, 0)),
            pl.BlockSpec((1, h1_dim), lambda i: (0, 0)),
            pl.BlockSpec((h1_dim, h2_dim), lambda i: (0, 0)),
            pl.BlockSpec((1, h2_dim), lambda i: (0, 0)),
            pl.BlockSpec((h2_dim, o_dim), lambda i: (0, 0)),
            pl.BlockSpec((1, o_dim), lambda i: (0, 0)),
        ],
        # Output at native o_dim: masked stores cost only vst-slot pressure,
        # which has slack in this mem-bound regime; net HBM bytes win.
        out_specs=pl.BlockSpec((bm, o_dim), lambda i: (i, 0)),
        compiler_params=pltpu.CompilerParams(
            # Batch tiles are independent -> shard across both TCs on v7x.
            dimension_semantics=("parallel",),
            vmem_limit_bytes=vmem_limit,
        ),
        cost_estimate=pl.CostEstimate(
            flops=flops, transcendentals=0, bytes_accessed=bytes_accessed
        ),
    )(xp, w1c, b1c, w2c, b2c, w3c, b3c)

    # Only the batch padding (if any) needs slicing away.
    return out if b_pad == B else out[:B]


def init_mlp_params(key, i_dim, o_dim):
    """Synthetic params matching nn.Linear(i_dim,100), nn.Linear(100,64),
    nn.Linear(64,o_dim); weights stored [in, out], biases [1, out]."""
    k1, k2, k3, k4, k5, k6 = jax.random.split(key, 6)

    def linear_init(kw, kb, fan_in, fan_out):
        bound = 1.0 / jnp.sqrt(jnp.float32(fan_in))
        w = jax.random.uniform(kw, (fan_in, fan_out), jnp.float32, -bound, bound)
        b = jax.random.uniform(kb, (1, fan_out), jnp.float32, -bound, bound)
        return w, b

    w1, b1 = linear_init(k1, k2, i_dim, 100)
    w2, b2 = linear_init(k3, k4, 100, 64)
    w3, b3 = linear_init(k5, k6, 64, o_dim)
    return {"w1": w1, "b1": b1, "w2": w2, "b2": b2, "w3": w3, "b3": b3}


def mlp_reference(x, params):
    h1 = jnp.maximum(x @ params["w1"] + params["b1"], 0.0)
    h2 = jnp.maximum(h1 @ params["w2"] + params["b2"], 0.0)
    return h2 @ params["w3"] + params["b3"]


if __name__ == "__main__":
    key = jax.random.PRNGKey(0)
    kx, kp = jax.random.split(key)

    B, I_DIM, O_DIM = 8, 32, 16
    x = jax.random.normal(kx, (B, I_DIM), jnp.float32)
    params = init_mlp_params(kp, I_DIM, O_DIM)
    ref = mlp_reference(x, params)

    # f32 path: exact, tight tolerance.
    out_f32 = jax.block_until_ready(mlp_forward(x, params, compute_dtype=jnp.float32))
    assert out_f32.shape == (B, O_DIM), out_f32.shape
    assert jnp.allclose(out_f32, ref, atol=1e-4, rtol=1e-4), "f32 mismatch vs reference"

    # bf16-operand path (f32 accumulate): exercises the bf16 MXU + in-kernel cast.
    out_bf16 = jax.block_until_ready(mlp_forward(x, params, compute_dtype=jnp.bfloat16))
    assert out_bf16.shape == (B, O_DIM), out_bf16.shape
    assert jnp.allclose(out_bf16, ref, atol=5e-2, rtol=5e-2), "bf16 mismatch vs reference"

    # Multi-tile grid path (batch padded to a multiple of bm, then sliced back).
    B2 = 40
    x2 = jax.random.normal(jax.random.PRNGKey(1), (B2, I_DIM), jnp.float32)
    ref2 = mlp_reference(x2, params)
    out2 = jax.block_until_ready(mlp_forward(x2, params, block_m=16))
    assert out2.shape == (B2, O_DIM), out2.shape
    assert jnp.allclose(out2, ref2, atol=1e-4, rtol=1e-4), "multi-tile mismatch vs reference"

    print("KERNEL_OK")
</pallas_src>

<mosaic_0001>
module attributes {stable_mosaic.version = 11 : i64} {
  func.func @_mlp_kernel(%arg0: i32, %arg1: memref<8x32xf32, #tpu.memory_space<vmem>>, %arg2: memref<32x100xf32, #tpu.memory_space<vmem>>, %arg3: memref<1x100xf32, #tpu.memory_space<vmem>>, %arg4: memref<100x64xf32, #tpu.memory_space<vmem>>, %arg5: memref<1x64xf32, #tpu.memory_space<vmem>>, %arg6: memref<64x16xf32, #tpu.memory_space<vmem>>, %arg7: memref<1x16xf32, #tpu.memory_space<vmem>>, %arg8: memref<8x16xf32, #tpu.memory_space<vmem>>) attributes {dimension_semantics = [#tpu.dimension_semantics<parallel>], iteration_bounds = array<i64: 1>, scalar_prefetch = 0 : i64, scratch_operands = 0 : i64, tpu.core_type = #tpu.core_type<tc>, window_params = [{transform_indices = @transform_0, window_bounds = array<i64: 8, 32>}, {pipeline_mode = #tpu.pipeline_mode<synchronous>, transform_indices = @transform_1, window_bounds = array<i64: 32, 100>}, {pipeline_mode = #tpu.pipeline_mode<synchronous>, transform_indices = @transform_2, window_bounds = array<i64: 1, 100>}, {pipeline_mode = #tpu.pipeline_mode<synchronous>, transform_indices = @transform_3, window_bounds = array<i64: 100, 64>}, {pipeline_mode = #tpu.pipeline_mode<synchronous>, transform_indices = @transform_4, window_bounds = array<i64: 1, 64>}, {pipeline_mode = #tpu.pipeline_mode<synchronous>, transform_indices = @transform_5, window_bounds = array<i64: 64, 16>}, {pipeline_mode = #tpu.pipeline_mode<synchronous>, transform_indices = @transform_6, window_bounds = array<i64: 1, 16>}, {transform_indices = @transform_7, window_bounds = array<i64: 8, 16>}]} {
    %c0 = arith.constant 0 : index
    %c0_0 = arith.constant 0 : index
    %0 = vector.load %arg1[%c0, %c0_0] : memref<8x32xf32, #tpu.memory_space<vmem>>, vector<8x32xf32>
    %c0_1 = arith.constant 0 : index
    %c0_2 = arith.constant 0 : index
    %1 = vector.load %arg2[%c0_1, %c0_2] : memref<32x100xf32, #tpu.memory_space<vmem>>, vector<32x100xf32>
    %cst = arith.constant dense<0.000000e+00> : vector<8x100xf32>
    %2 = tpu.matmul %0, %1, %cst {dimension_numbers = #tpu.dot_dimension_numbers<[1], [0], [0], [1], [0, 0, 1, 1], [], []>} : vector<8x32xf32>, vector<32x100xf32>, vector<8x100xf32> -> vector<8x100xf32>
    %c0_3 = arith.constant 0 : index
    %c0_4 = arith.constant 0 : index
    %3 = vector.load %arg3[%c0_3, %c0_4] : memref<1x100xf32, #tpu.memory_space<vmem>>, vector<1x100xf32>
    %4 = vector.broadcast %3 : vector<1x100xf32> to vector<8x100xf32>
    %5 = arith.addf %2, %4 : vector<8x100xf32>
    %cst_5 = arith.constant 0.000000e+00 : f32
    %6 = vector.broadcast %cst_5 : f32 to vector<8x100xf32>
    %7 = arith.maximumf %5, %6 : vector<8x100xf32>
    %c0_6 = arith.constant 0 : index
    %c0_7 = arith.constant 0 : index
    %8 = vector.load %arg4[%c0_6, %c0_7] : memref<100x64xf32, #tpu.memory_space<vmem>>, vector<100x64xf32>
    %cst_8 = arith.constant dense<0.000000e+00> : vector<8x64xf32>
    %9 = tpu.matmul %7, %8, %cst_8 {dimension_numbers = #tpu.dot_dimension_numbers<[1], [0], [0], [1], [0, 0, 1, 1], [], []>} : vector<8x100xf32>, vector<100x64xf32>, vector<8x64xf32> -> vector<8x64xf32>
    %c0_9 = arith.constant 0 : index
    %c0_10 = arith.constant 0 : index
    %10 = vector.load %arg5[%c0_9, %c0_10] : memref<1x64xf32, #tpu.memory_space<vmem>>, vector<1x64xf32>
    %11 = vector.broadcast %10 : vector<1x64xf32> to vector<8x64xf32>
    %12 = arith.addf %9, %11 : vector<8x64xf32>
    %cst_11 = arith.constant 0.000000e+00 : f32
    %13 = vector.broadcast %cst_11 : f32 to vector<8x64xf32>
    %14 = arith.maximumf %12, %13 : vector<8x64xf32>
    %c0_12 = arith.constant 0 : index
    %c0_13 = arith.constant 0 : index
    %15 = vector.load %arg6[%c0_12, %c0_13] : memref<64x16xf32, #tpu.memory_space<vmem>>, vector<64x16xf32>
    %cst_14 = arith.constant dense<0.000000e+00> : vector<8x16xf32>
    %16 = tpu.matmul %14, %15, %cst_14 {dimension_numbers = #tpu.dot_dimension_numbers<[1], [0], [0], [1], [0, 0, 1, 1], [], []>} : vector<8x64xf32>, vector<64x16xf32>, vector<8x16xf32> -> vector<8x16xf32>
    %c0_15 = arith.constant 0 : index
    %c0_16 = arith.constant 0 : index
    %17 = vector.load %arg7[%c0_15, %c0_16] : memref<1x16xf32, #tpu.memory_space<vmem>>, vector<1x16xf32>
    %18 = vector.broadcast %17 : vector<1x16xf32> to vector<8x16xf32>
    %19 = arith.addf %16, %18 : vector<8x16xf32>
    %c0_17 = arith.constant 0 : index
    %c0_18 = arith.constant 0 : index
    %20 = vector.load %arg8[%c0_17, %c0_18] : memref<8x16xf32, #tpu.memory_space<vmem>>, vector<8x16xf32>
    tpu.vector_store %arg8[%c0_17, %c0_18], %19 {strides = array<i32>} : memref<8x16xf32, #tpu.memory_space<vmem>>, vector<8x16xf32>,
    return
  }
  func.func @transform_0(%arg0: i32) -> (i32, i32) {
    %c0_i32 = arith.constant 0 : i32
    %c0_i32_0 = arith.constant 0 : i32
    return %arg0, %c0_i32 : i32, i32
  }
  func.func @transform_1(%arg0: i32) -> (i32, i32) {
    %c0_i32 = arith.constant 0 : i32
    %c0_i32_0 = arith.constant 0 : i32
    %c0_i32_1 = arith.constant 0 : i32
    return %c0_i32, %c0_i32_0 : i32, i32
  }
  func.func @transform_2(%arg0: i32) -> (i32, i32) {
    %c0_i32 = arith.constant 0 : i32
    %c0_i32_0 = arith.constant 0 : i32
    %c0_i32_1 = arith.constant 0 : i32
    return %c0_i32, %c0_i32_0 : i32, i32
  }
  func.func @transform_3(%arg0: i32) -> (i32, i32) {
    %c0_i32 = arith.constant 0 : i32
    %c0_i32_0 = arith.constant 0 : i32
    %c0_i32_1 = arith.constant 0 : i32
    return %c0_i32, %c0_i32_0 : i32, i32
  }
  func.func @transform_4(%arg0: i32) -> (i32, i32) {
    %c0_i32 = arith.constant 0 : i32
    %c0_i32_0 = arith.constant 0 : i32
    %c0_i32_1 = arith.constant 0 : i32
    return %c0_i32, %c0_i32_0 : i32, i32
  }
  func.func @transform_5(%arg0: i32) -> (i32, i32) {
    %c0_i32 = arith.constant 0 : i32
    %c0_i32_0 = arith.constant 0 : i32
    %c0_i32_1 = arith.constant 0 : i32
    return %c0_i32, %c0_i32_0 : i32, i32
  }
  func.func @transform_6(%arg0: i32) -> (i32, i32) {
    %c0_i32 = arith.constant 0 : i32
    %c0_i32_0 = arith.constant 0 : i32
    %c0_i32_1 = arith.constant 0 : i32
    return %c0_i32, %c0_i32_0 : i32, i32
  }
  func.func @transform_7(%arg0: i32) -> (i32, i32) {
    %c0_i32 = arith.constant 0 : i32
    %c0_i32_0 = arith.constant 0 : i32
    return %arg0, %c0_i32 : i32, i32
  }
}

</mosaic_0001>

<bundles_post_ra>
// kernel: mlp_forward.1
= control target key start
LH: loop header
LB: loop body
LE: loop exit
PB: predicated region body
PF: predicated region fallthrough
CT: control target
= control target key end

     0   :  { %v476_v3 = vmov 0.0|0.0   ;;  %vm477_vm0 = vmmov 0   ;;  %v478_v6 = vmov 0.0   ;;  %s634_s0 = inlined_call_operand.vmem [shape: f32[8,32], index: 0, kind: input, shape index: {}]   ;;  %s635_s1 = inlined_call_operand.vmem [shape: f32[32,100], index: 1, kind: input, shape index: {}]   ;;  %s636_s2 = inlined_call_operand.vmem [shape: f32[1,100], index: 2, kind: input, shape index: {}]   ;;  %s637_s3 = inlined_call_operand.vmem [shape: f32[100,64], index: 3, kind: input, shape index: {}]   ;;  %s638_s4 = inlined_call_operand.vmem [shape: f32[1,64], index: 4, kind: input, shape index: {}]   ;;  %s639_s5 = inlined_call_operand.vmem [shape: f32[64,16], index: 5, kind: input, shape index: {}]   ;;  %s640_s6 = inlined_call_operand.vmem [shape: f32[1,16], index: 6, kind: input, shape index: {}]   ;;  %s641_s7 = inlined_call_operand.hbm [shape: f32[8,16], index: 7, kind: output, shape index: {}]  }
   0x1   :  { %v28_v0 = vld [vmem:[%s635_s1] sm:$0xff]  ;;  %v29_v1 = vld [vmem:[%s635_s1 + $0x8] sm:$0xff]  ;;  %v30_v2 = vld [vmem:[%s635_s1 + $0x10] sm:$0xff]  ;;  %412 = vmatprep.subr.bf16.mxu0 %v476_v3  ;;  %361 = vmatprep.mubr.msk.f32.mxu0 %vm477_vm0, %v478_v6 }
   0x2   :  { %v413_v4 = vpack.c.bf16 %v29_v1, %v28_v0  ;;  %v31_v5 = vld [vmem:[%s635_s1 + $0x18] sm:$0xff]  ;;  %v114_v7 = vld [vmem:[%s637_s3] sm:$0xff]  ;;  %418 = vmatprep.subr.bf16.mxu1 %v476_v3  ;;  %v115_v8 = vld [vmem:[%s637_s3 + $0x8] sm:$0xff]  ;;  %390 = vmatprep.mubr.msk.f32.mxu1 %vm477_vm0, %v478_v6 }
   0x3   :  { %v116_v9 = vld [vmem:[%s637_s3 + $0x10] sm:$0xff]  ;;  %v117_v10 = vld [vmem:[%s637_s3 + $0x18] sm:$0xff]  ;;  %v416_v11 = vpack.c.bf16 %v31_v5, %v30_v2  ;;  %v419_v12 = vpack.c.bf16 %v115_v8, %v114_v7 }
   0x4   :  { %414 = vmatpush3.bf16.msra.mxu0 %v413_v4  ;;  %v422_v13 = vpack.c.bf16 %v117_v10, %v116_v9 }
   0x5   :  { %415 = vmatprep.subr.bf16.mxu0 %v476_v3  ;;  %420 = vmatpush3.bf16.msra.mxu1 %v419_v12 }
   0x6   :  { %12 = vsyncpa [#allocation3], 0  ;;  %421 = vmatprep.subr.bf16.mxu1 %v476_v3  ;;  %v118_v14 = vld [vmem:[%s637_s3 + $0x20] sm:$0xff]  ;;  %v119_v15 = vld [vmem:[%s637_s3 + $0x28] sm:$0xff]  ;;  %vm39_vm1 = vcmask 261120   ;;  %vm138_vm2 = vcmask 1043456  }
   0x7   :  { %v27_v16 = vld [vmem:[%s634_s0] sm:$0xff]  ;;  %v425_v17 = vpack.c.bf16 %v119_v15, %v118_v14  ;;  %v120_v18 = vld [vmem:[%s637_s3 + $0x30] sm:$0xff]  ;;  %v121_v19 = vld [vmem:[%s637_s3 + $0x38] sm:$0xff]  ;;  %vm134_vm3 = vcmask 818176   ;;  %vm228_vm4 = vcmask 523264   ;;  %s479_s30 = smov [#allocation2]  }
   0x8   :  { %417 = vmatpush3.bf16.msra.mxu0 %v416_v11  ;;  %v428_v20 = vpack.c.bf16 %v121_v19, %v120_v18  ;;  %v122_v21 = vld [vmem:[%s637_s3 + $0x40] sm:$0xff]  ;;  %v123_v22 = vld [vmem:[%s637_s3 + $0x48] sm:$0xff]  ;;  %v124_v24 = vld [vmem:[%s637_s3 + $0x50] sm:$0xff]  ;;  %s310_s8 = sshll.u32 %s479_s30, 4  ;;  %vm302_vm5 = vcmask 130048   ;;  %s311_s8 = int_to_ptr.vmem [resolvable:$true] %s310_s8 }
   0x9   :  { %436 = vmatprep.subr.bf16.mxu0 %v476_v3  ;;  %423 = vmatpush3.bf16.msra.mxu1 %v422_v13  ;;  %v431_v23 = vpack.c.bf16 %v123_v22, %v122_v21  ;;  %v125_v25 = vld [vmem:[%s637_s3 + $0x58] sm:$0xff]  ;;  %v126_v27 = vld [vmem:[%s637_s3 + $0x60] sm:$0xf]  ;;  %v214_v29 = vld [vmem:[%s639_s5 + $0x8] sm:$0xff]  ;;  %p457_p1 = scmp.lt.s32.totalorder %s311_s8, %s311_s8 }
   0xa   :  { %424 = vmatprep.subr.bf16.mxu1 %v476_v3  ;;  %v434_v26 = vpack.c.bf16 %v125_v25, %v124_v24  ;;  %v213_v28 = vld [vmem:[%s639_s5] sm:$0xff]  ;;  %v215_v30 = vld [vmem:[%s639_s5 + $0x10] sm:$0xff]  ;;  %v216_v32 = vld [vmem:[%s639_s5 + $0x18] sm:$0xff] }
   0xb   :  { %362 = vmatmul.mubr.msk.f32.vlgmr.msra.gmra.mrb[0].mxu0 %vm39_vm1, %v27_v16  ;;  %v437_v31 = vpack.c.bf16 %v214_v29, %v213_v28  ;;  %v440_v33 = vpack.c.bf16 %v216_v32, %v215_v30  ;;  %v217_v34 = vld [vmem:[%s639_s5 + $0x20] sm:$0xff]  ;;  %v218_v35 = vld [vmem:[%s639_s5 + $0x28] sm:$0xff]  ;;  %v219_v42 = vld [vmem:[%s639_s5 + $0x30] sm:$0xff] }
   0xc   :  { %409 = vmatprep.mubr.msk.f32.mxu0 %vm477_vm0, %v478_v6  ;;  %v443_v36 = vpack.c.bf16 %v218_v35, %v217_v34  ;;  %v318_v37 = vld [vmem:[%s636_s2] ss:$0 sm:$0xff]  ;;  %v220_v43 = vld [vmem:[%s639_s5 + $0x38] sm:$0xff]  ;;  %s452_s5 = scalar_lea.vmem %s311_s8, 128 }
   0xd   :  { %426 = vmatpush3.bf16.msra.mxu1 %v425_v17  ;;  %438 = vmatpush3.bf16.msra.mxu0 %v437_v31  ;;  %v446_v44 = vpack.c.bf16 %v220_v43, %v219_v42  ;;  %v320_v45 = vld [vmem:[%s638_s4] ss:$0 sm:$0xff]  ;;  %p453_p0 = scmp.ne.s32.totalorder %s311_s8, %s452_s5  ;;  %p458_p2 = scmp.lt.s32.totalorder %s452_s5, %s452_s5 }
   0xe   :  { %427 = vmatprep.subr.bf16.mxu1 %v476_v3  ;;  %439 = vmatprep.subr.bf16.mxu0 %v476_v3  ;;  %v323_v50 = vld [vmem:[%s640_s6] ss:$0 sm:$0xff] }
   0xf   :  { %p459_p3 = por %p458_p2, %p457_p1 }
  0x11   :  { %429 = vmatpush3.bf16.msra.mxu1 %v428_v20  ;;  %441 = vmatpush3.bf16.msra.mxu0 %v440_v33  ;;  %p460_p4 = pnand %p459_p3, %p453_p0 }
  0x12   :  { %430 = vmatprep.subr.bf16.mxu1 %v476_v3  ;;  %442 = vmatprep.subr.bf16.mxu0 %v476_v3 }
  0x15   :  { %432 = vmatpush3.bf16.msra.mxu1 %v431_v23  ;;  %444 = vmatpush3.bf16.msra.mxu0 %v443_v36 }
  0x16   :  { %433 = vmatprep.subr.bf16.mxu1 %v476_v3  ;;  %445 = vmatprep.subr.bf16.mxu0 %v476_v3 }
  0x19   :  { %435 = vmatpush3.bf16.msra.mxu1 %v434_v26  ;;  %447 = vmatpush3.bf16.msra.mxu0 %v446_v44 }
  0x1a   :  { %388 = vmatprep.subr.mxu1 %v478_v6 }
  0x1d   :  { %389 = vmatpush3.msk.msra.mxu1 %vm138_vm2, %v126_v27 }
  0xde   :  { %v109_v38 = vpop.f32.mrb[0].mxu0 }
  0xdf   :  { %v110_v39 = vadd.f32 %v318_v37, %v109_v38  ;;  %v363_v40 = vpop.f32.mrb[1].mxu0 }
  0xe1   :  { %v113_v41 = vmax.f32 %v110_v39, 0.0 }
  0xe3   :  { %391 = vmatmul.mubr.msk.f32.vlgmr.msra.gmra.mrb[0].mxu1 %vm134_vm3, %v113_v41 }
 0x1b6   :  { %v208_v46 = vpop.f32.mrb[0].mxu1 }
 0x1b7   :  { %v209_v47 = vadd.f32 %v320_v45, %v208_v46  ;;  %v392_v48 = vpop.f32.mrb[1].mxu1 }
 0x1b9   :  { %v212_v49 = vmax.f32 %v209_v47, 0.0 }
 0x1bb   :  { %410 = vmatmul.mubr.msk.f32.vlgmr.msra.gmra.mrb[2].mxu0 %vm228_vm4, %v212_v49 }
 0x28e   :  { %v298_v51 = vpop.f32.mrb[2].mxu0 }
 0x28f   :  { %v299_v52 = vadd.f32 %v323_v50, %v298_v51  ;;  %v411_v53 = vpop.f32.mrb[3].mxu0 }
 0x291   :  { %303 = vst.msk [vmem:[#allocation2] sm:$0xff] %vm302_vm5, %v299_v52 }
 0x292   :  { %463 = shalt.err (!%p460_p4)
}
 0x293   :  { %s464_s10 = scalar_lea.hbm %s641_s7, 128 }
 0x294   :  { %p465_p5 = scmp.ne.s32.totalorder %s641_s7, %s464_s10  ;;  %p468_p6 = scmp.lt.u32.totalorder %s464_s10, %s641_s7 }
 0x296   :  { %p470_p7 = pnand %p468_p6, %p465_p5 }
 0x298   :  { %473 = shalt.err (!%p470_p7)
}
 0x299   :  { %313 = dma.vmem_to_hbm [thread:$0]  %s311_s8, 128, %s641_s7, [#allocation3]  }
 0x29a   :  { %474 = dma.done.wait [#allocation3], 128  }
 0x29b   :  { %475 = vsyncadd [#allocation3], 4294967168 }
 0x29c   :  { %317 = vsyncpa [#allocation3], 1 }

</bundles_post_ra>
